<compile_context>
chip_gen: v6e
topology: v6e:2x2x1
jax: 0.10.0
libtpu: 0.0.40
codegen_flags: <defaults>
</compile_context>

<pallas_src>
import functools

import jax
import jax.numpy as jnp
from jax.experimental import pallas as pl
from jax.experimental.pallas import tpu as pltpu


def _round_up(a: int, b: int) -> int:
    return (a + b - 1) // b * b


def _linear_l1_kernel(x_ref, w_ref, b_ref, out_ref, *scratch, compute_dtype):
    """Tiled linear + L1-vs-zeros partial reduction.

    x_ref:   (TM, TK)  input tile                         (block i, k)
    w_ref:   (TK, TN)  weight tile, already transposed     (block k, j)
    b_ref:   (1, TN)   f32 bias tile                       (block j)
    out_ref: (TM, TN)  f32 per-M-block partial-sum bucket  (block i)
    scratch: optional (TM, TN) f32 VMEM K-accumulator (only when gk > 1)
    """
    j = pl.program_id(1)
    k = pl.program_id(2)
    nk = pl.num_programs(2)

    # Zero this M block's resident bucket at the start of its (j, k) sweep.
    @pl.when((j == 0) & (k == 0))
    def _():
        out_ref[...] = jnp.zeros_like(out_ref)

    # MXU: (TM, TK) @ (TK, TN) -> (TM, TN), f32 accumulation.  The cast is a
    # no-op if the wrapper already produced bf16 tiles.
    partial = jnp.dot(
        x_ref[...].astype(compute_dtype),
        w_ref[...].astype(compute_dtype),
        preferred_element_type=jnp.float32,
    )

    if scratch:
        # gk > 1: accumulate the signed matmul over K in an f32 VMEM scratch,
        # apply bias + |.| only on the last K step.
        acc_ref, = scratch

        @pl.when(k == 0)
        def _():
            acc_ref[...] = jnp.zeros_like(acc_ref)

        acc_ref[...] += partial

        @pl.when(k == nk - 1)
        def _():
            out_ref[...] += jnp.abs(acc_ref[...] + b_ref[...])
    else:
        # gk == 1 (weight-resident fast path): fuse bias + |.| directly.
        out_ref[...] += jnp.abs(partial + b_ref[...])


def model_with_loss(x, weight, bias, loss_reduction="mean", *,
                    compute_dtype=jnp.bfloat16):
    """JAX/Pallas equivalent of ModelWithLoss(nn.Linear(D_in, D_out), loss_reduction)(x).

    Args:
        x:      (B, D_in) float input.
        weight: (D_out, D_in) float (PyTorch nn.Linear convention, NOT transposed).
        bias:   (D_out,) float.
        loss_reduction: 'mean' or 'sum'.

    Returns:
        Scalar float32 loss.
    """
    if loss_reduction not in ("mean", "sum"):
        raise ValueError(
            f"Passed loss_reduction={loss_reduction}. Only ['mean', 'sum'] supported."
        )
    B, d_in = x.shape
    d_out, d_in_w = weight.shape
    assert d_in_w == d_in, (weight.shape, x.shape)

    # ---- generation-aware VMEM budget (v7x: 64 MiB physical; v5e/v6e: 128) ----
    try:
        vmem_cap = int(pltpu.get_tpu_info().vmem_capacity_bytes)
    except Exception:
        vmem_cap = 64 * 1024 * 1024  # conservative (v7x-sized) fallback
    vmem_limit = min(vmem_cap // 2, 64 * 1024 * 1024)
    budget = int(vmem_limit * 0.85)

    c_item = jnp.dtype(compute_dtype).itemsize
    x_item = jnp.dtype(x.dtype).itemsize

    n_pad = _round_up(d_out, 128)
    k_pad = _round_up(d_in, 128)
    tm_cap = _round_up(B, 16)  # bf16 packs 16 rows per sublane group

    # ---- weight-resident fast path: tn = n_pad, tk = k_pad, weight read once ----
    def fast_footprint(tm, x_bytes):
        return (2 * k_pad * n_pad * c_item          # resident weight (double-buffered)
                + 2 * tm * k_pad * x_bytes          # streamed x tiles
                + 2 * n_pad * 4                     # bias
                + 2 * tm * n_pad * 4)               # per-M bucket (no acc when gk == 1)

    fast = None
    for tm_try in (512, 256, 128, 64, 32, 16):
        tm_try = min(tm_try, tm_cap)
        x_needs_pad_try = (_round_up(B, tm_try) != B) or (k_pad != d_in)
        xb = c_item if x_needs_pad_try else x_item
        if fast_footprint(tm_try, xb) <= budget:
            fast = (tm_try, x_needs_pad_try)
            break

    if fast is not None:
        tm, x_needs_pad = fast
        tn, tk = n_pad, k_pad
    else:
        # ---- tiled fallback (weight too big for VMEM): large streamed tiles ----
        tm = min(256, tm_cap)
        tn = min(512, n_pad)
        tk = min(512, k_pad)

        def tiled_footprint(tm_, tn_, tk_):
            acc = tm_ * tn_ * 4 if tk_ < k_pad else 0
            return (2 * tm_ * tk_ * c_item + 2 * tk_ * tn_ * c_item
                    + 2 * tn_ * 4 + 2 * tm_ * tn_ * 4 + acc)

        while tiled_footprint(tm, tn, tk) > budget and (tk > 128 or tn > 128 or tm > 16):
            if tk >= max(tn, tm, 256):
                tk //= 2
            elif tn >= max(tm, 256):
                tn //= 2
            else:
                tm = max(16, tm // 2)
        x_needs_pad = True  # x is re-read gn times; keep the fused pad+bf16 copy

    # Extra zero padding so the tiles divide the padded dims exactly (padded
    # K / N contribute exactly 0 to the loss).
    n_pad = _round_up(n_pad, tn)
    k_pad = _round_up(k_pad, tk)
    m_pad = _round_up(B, tm)
    gm, gn, gk = m_pad // tm, n_pad // tn, k_pad // tk

    # Weight: transpose + cast + zero-pad once in the wrapper (single fused
    # copy) so the kernel runs a plain NN contraction on the MXU.
    w_t = jnp.pad(weight.T.astype(compute_dtype),
                  ((0, k_pad - d_in), (0, n_pad - d_out)))
    b_p = jnp.pad(bias.astype(jnp.float32), (0, n_pad - d_out)).reshape(1, n_pad)

    if x_needs_pad:
        x_in = jnp.pad(x.astype(compute_dtype),
                       ((0, m_pad - B), (0, k_pad - d_in)))
    else:
        x_in = x  # no HBM round trip; cast to compute dtype inside the kernel

    kernel = functools.partial(_linear_l1_kernel, compute_dtype=compute_dtype)
    scratch_shapes = [] if gk == 1 else [pltpu.VMEM((tm, tn), jnp.float32)]

    w_reads = 1 if (gn == 1 and gk == 1) else gm
    bytes_accessed = (x_in.size * jnp.dtype(x_in.dtype).itemsize * gn
                      + w_t.size * c_item * w_reads
                      + b_p.size * 4
                      + m_pad * tn * 4)

    bucket = pl.pallas_call(
        kernel,
        out_shape=jax.ShapeDtypeStruct((m_pad, tn), jnp.float32),
        grid_spec=pltpu.PrefetchScalarGridSpec(
            num_scalar_prefetch=0,
            grid=(gm, gn, gk),
            in_specs=[
                pl.BlockSpec((tm, tk), lambda i, j, k: (i, k)),   # x
                pl.BlockSpec((tk, tn), lambda i, j, k: (k, j)),   # weight^T (constant
                                                                  # block in fast path -> read once)
                pl.BlockSpec((1, tn), lambda i, j, k: (0, j)),    # bias
            ],
            out_specs=pl.BlockSpec((tm, tn), lambda i, j, k: (i, 0)),
            scratch_shapes=scratch_shapes,
        ),
        compiler_params=pltpu.CompilerParams(
            # Per-M-block buckets make the M axis megacore-splittable (v7x);
            # N and K accumulate into the same bucket -> sequential.
            dimension_semantics=("parallel", "arbitrary", "arbitrary"),
            vmem_limit_bytes=int(vmem_limit),
        ),
        cost_estimate=pl.CostEstimate(
            flops=2 * m_pad * n_pad * k_pad,
            transcendentals=0,
            bytes_accessed=int(bytes_accessed),
        ),
    )(x_in, w_t, b_p)

    total = jnp.sum(bucket)  # tiny tree-reduce in XLA
    # Zero-padded batch rows produce exactly |bias_j| per valid column (padded
    # weight columns and bias entries are zero), so correct for them here
    # instead of masking inside the kernel.
    if m_pad > B:
        total = total - jnp.float32(m_pad - B) * jnp.sum(
            jnp.abs(bias.astype(jnp.float32)))
    if loss_reduction == "mean":
        total = total / jnp.float32(B * d_out)   # unpadded B * D_out
    return total


def _reference(x, weight, bias, loss_reduction, compute_dtype=jnp.bfloat16):
    """Matched-precision reference: bf16 matmul, f32 accumulation (like the kernel)."""
    o = jnp.dot(x.astype(compute_dtype), weight.astype(compute_dtype).T,
                preferred_element_type=jnp.float32) + bias.astype(jnp.float32)
    a = jnp.abs(o)
    return jnp.mean(a) if loss_reduction == "mean" else jnp.sum(a)


if __name__ == "__main__":
    # Small, ragged vs. the 128-lane / 16-sublane tiles on purpose: exercises
    # N/K zero-padding, the padded-row bias correction and the resident-weight
    # fast path (gn = gk = 1).
    B, D_IN, D_OUT = 24, 96, 80

    key = jax.random.PRNGKey(0)
    kx, kw, kb = jax.random.split(key, 3)
    x = jax.random.normal(kx, (B, D_IN), dtype=jnp.float32)
    # Deterministic synthetic parameters (mimic nn.Linear's uniform init range).
    bound = 1.0 / (D_IN ** 0.5)
    weight = jax.random.uniform(kw, (D_OUT, D_IN), jnp.float32, -bound, bound)
    bias = jax.random.uniform(kb, (D_OUT,), jnp.float32, -bound, bound)

    for red in ("mean", "sum"):
        loss = jax.block_until_ready(
            model_with_loss(x, weight, bias, loss_reduction=red))
        ref = _reference(x, weight, bias, red)
        err = abs(float(loss) - float(ref))
        tol = 2e-3 * max(abs(float(ref)), 1.0)
        assert err <= tol, (red, float(loss), float(ref), err)

    print("KERNEL_OK")
</pallas_src>

<mosaic_0001>
module attributes {stable_mosaic.version = 11 : i64} {
  func.func @_linear_l1_kernel(%arg0: i32, %arg1: i32, %arg2: i32, %arg3: memref<32x128xbf16, #tpu.memory_space<vmem>>, %arg4: memref<128x128xbf16, #tpu.memory_space<vmem>>, %arg5: memref<1x128xf32, #tpu.memory_space<vmem>>, %arg6: memref<32x128xf32, #tpu.memory_space<vmem>>) attributes {dimension_semantics = [#tpu.dimension_semantics<parallel>, #tpu.dimension_semantics<arbitrary>, #tpu.dimension_semantics<arbitrary>], iteration_bounds = array<i64: 1, 1, 1>, scalar_prefetch = 0 : i64, scratch_operands = 0 : i64, tpu.core_type = #tpu.core_type<tc>, window_params = [{transform_indices = @transform_0, window_bounds = array<i64: 32, 128>}, {transform_indices = @transform_1, window_bounds = array<i64: 128, 128>}, {transform_indices = @transform_2, window_bounds = array<i64: 1, 128>}, {transform_indices = @transform_3, window_bounds = array<i64: 32, 128>}]} {
    %c0_i32 = arith.constant 0 : i32
    %0 = arith.cmpi eq, %arg1, %c0_i32 : i32
    %c0_i32_0 = arith.constant 0 : i32
    %1 = arith.cmpi eq, %arg2, %c0_i32_0 : i32
    %2 = arith.andi %0, %1 : i1
    %3 = arith.extui %2 : i1 to i32
    %c0_i32_1 = arith.constant 0 : i32
    %4 = arith.cmpi ne, %3, %c0_i32_1 : i32
    scf.if %4 {
      %cst_11 = arith.constant 0.000000e+00 : f32
      %15 = vector.broadcast %cst_11 : f32 to vector<32x128xf32>
      %c0_12 = arith.constant 0 : index
      %c0_13 = arith.constant 0 : index
      %16 = vector.load %arg6[%c0_12, %c0_13] : memref<32x128xf32, #tpu.memory_space<vmem>>, vector<32x128xf32>
      tpu.vector_store %arg6[%c0_12, %c0_13], %15 {strides = array<i32>} : memref<32x128xf32, #tpu.memory_space<vmem>>, vector<32x128xf32>,
    } else {
    }
    %c0 = arith.constant 0 : index
    %c0_2 = arith.constant 0 : index
    %5 = vector.load %arg3[%c0, %c0_2] : memref<32x128xbf16, #tpu.memory_space<vmem>>, vector<32x128xbf16>
    %c0_3 = arith.constant 0 : index
    %c0_4 = arith.constant 0 : index
    %6 = vector.load %arg4[%c0_3, %c0_4] : memref<128x128xbf16, #tpu.memory_space<vmem>>, vector<128x128xbf16>
    %cst = arith.constant dense<0.000000e+00> : vector<32x128xf32>
    %7 = tpu.matmul %5, %6, %cst {dimension_numbers = #tpu.dot_dimension_numbers<[1], [0], [0], [1], [0, 0, 1, 1], [], []>} : vector<32x128xbf16>, vector<128x128xbf16>, vector<32x128xf32> -> vector<32x128xf32>
    %c0_5 = arith.constant 0 : index
    %c0_6 = arith.constant 0 : index
    %8 = vector.load %arg6[%c0_5, %c0_6] : memref<32x128xf32, #tpu.memory_space<vmem>>, vector<32x128xf32>
    %c0_7 = arith.constant 0 : index
    %c0_8 = arith.constant 0 : index
    %9 = vector.load %arg5[%c0_7, %c0_8] : memref<1x128xf32, #tpu.memory_space<vmem>>, vector<1x128xf32>
    %10 = vector.broadcast %9 : vector<1x128xf32> to vector<32x128xf32>
    %11 = arith.addf %7, %10 : vector<32x128xf32>
    %12 = math.absf %11 : vector<32x128xf32>
    %13 = arith.addf %8, %12 : vector<32x128xf32>
    %c0_9 = arith.constant 0 : index
    %c0_10 = arith.constant 0 : index
    %14 = vector.load %arg6[%c0_9, %c0_10] : memref<32x128xf32, #tpu.memory_space<vmem>>, vector<32x128xf32>
    tpu.vector_store %arg6[%c0_9, %c0_10], %13 {strides = array<i32>} : memref<32x128xf32, #tpu.memory_space<vmem>>, vector<32x128xf32>,
    return
  }
  func.func @transform_0(%arg0: i32, %arg1: i32, %arg2: i32) -> (i32, i32) {
    %c0_i32 = arith.constant 0 : i32
    return %arg0, %arg2 : i32, i32
  }
  func.func @transform_1(%arg0: i32, %arg1: i32, %arg2: i32) -> (i32, i32) {
    %c0_i32 = arith.constant 0 : i32
    return %arg2, %arg1 : i32, i32
  }
  func.func @transform_2(%arg0: i32, %arg1: i32, %arg2: i32) -> (i32, i32) {
    %c0_i32 = arith.constant 0 : i32
    %c0_i32_0 = arith.constant 0 : i32
    return %c0_i32, %arg1 : i32, i32
  }
  func.func @transform_3(%arg0: i32, %arg1: i32, %arg2: i32) -> (i32, i32) {
    %c0_i32 = arith.constant 0 : i32
    %c0_i32_0 = arith.constant 0 : i32
    return %arg0, %c0_i32 : i32, i32
  }
}

</mosaic_0001>

<bundles_post_ra>
// kernel: tpu_custom_call.1
= control target key start
LH: loop header
LB: loop body
LE: loop exit
PB: predicated region body
PF: predicated region fallthrough
CT: control target
= control target key end

     0   :  { %8 = vsyncpa [#allocation3], 0  ;;  %s388_s0 = inlined_call_operand.hbm [shape: bf16[32,128], index: 0, kind: input, shape index: {}]   ;;  %s389_s1 = inlined_call_operand.hbm [shape: bf16[128,128], index: 1, kind: input, shape index: {}]   ;;  %s390_s2 = inlined_call_operand.vmem [shape: f32[1,128], index: 2, kind: input, shape index: {}]   ;;  %s391_s3 = inlined_call_operand.hbm [shape: f32[32,128], index: 3, kind: output, shape index: {}]  }
   0x1   :  { %9 = vsyncpa [#allocation6], 0 }
   0x2   :  { %10 = vsyncpa [#allocation4], 0  ;;  %s349_s12 = smov [#allocation2]  }
   0x3   :  { %s16_s13 = sshll.u32 %s349_s12, 4  ;;  %s17_s13 = int_to_ptr.vmem [resolvable:$true] %s16_s13 }
   0x4   :  { %s291_s14 = scalar_lea.vmem %s17_s13, 256  ;;  %p296_p1 = scmp.lt.s32.totalorder %s17_s13, %s17_s13 }
   0x5   :  { %p292_p0 = scmp.ne.s32.totalorder %s17_s13, %s291_s14  ;;  %p297_p2 = scmp.lt.s32.totalorder %s291_s14, %s291_s14 }
   0x7   :  { %p298_p3 = por %p297_p2, %p296_p1 }
   0x9   :  { %p299_p4 = pnand %p298_p3, %p292_p0 }
   0xb   :  { %302 = shalt.err (!%p299_p4)
}
   0xc   :  { %s350_s15 = smov 64   ;;  %s351_s16 = smov 4  }
   0xd   :  { %22 = dma.hbm_to_vmem [thread:$0]  %s388_s0, 256, %s17_s13, [#allocation3], %s350_s15, %s350_s15, %s351_s16  }
   0xe   :  { %s352_s19 = smov [#allocation5]  }
   0xf   :  { %s28_s20 = sshll.u32 %s352_s19, 4  ;;  %s29_s20 = int_to_ptr.vmem [resolvable:$true] %s28_s20 }
  0x10   :  { %s311_s21 = scalar_lea.vmem %s29_s20, 1024  ;;  %p316_p6 = scmp.lt.s32.totalorder %s29_s20, %s29_s20 }
  0x11   :  { %p312_p5 = scmp.ne.s32.totalorder %s29_s20, %s311_s21  ;;  %p317_p7 = scmp.lt.s32.totalorder %s311_s21, %s311_s21 }
  0x13   :  { %p318_p8 = por %p317_p7, %p316_p6 }
  0x15   :  { %p319_p9 = pnand %p318_p8, %p312_p5 }
  0x17   :  { %322 = shalt.err (!%p319_p9)
}
  0x18   :  { %34 = dma.hbm_to_vmem [thread:$0]  %s389_s1, 1024, %s29_s20, [#allocation6], %s350_s15, %s350_s15, %s351_s16  }
  0x19   :  { %343 = dma.done.wait [#allocation3], 256  }
  0x1a   :  { %344 = vsyncadd [#allocation3], 4294967040 }
  0x1b   :  { %345 = dma.done.wait [#allocation6], 1024  }
  0x1c   :  { %346 = vsyncadd [#allocation6], 4294966272  ;;  %v273_v0 = vld [vmem:[#allocation5 + $0x38] sm:$0xff]   ;;  %v274_v1 = vld [vmem:[#allocation5 + $0x30] sm:$0xff]   ;;  %s353_s24 = smov [#allocation7]  }
  0x1d   :  { %245 = vmatprep.subr.bf16.mxu0 %v273_v0  ;;  %v275_v2 = vld [vmem:[#allocation5 + $0x28] sm:$0xff]   ;;  %v276_v3 = vld [vmem:[#allocation5 + $0x20] sm:$0xff]   ;;  %v281_v4 = vld [vmem:[#allocation2] sm:$0xff]   ;;  %s211_s25 = sshll.u32 %s353_s24, 4  ;;  %s212_s25 = int_to_ptr.vmem [resolvable:$true] %s211_s25 }
  0x1e   :  { %246 = vmatpush3.bf16.msra.mxu0 %v273_v0  ;;  %261 = vmatprep.mubr.bf16.mxu0 %v281_v4  ;;  %v277_v5 = vld [vmem:[#allocation5 + $0x18] sm:$0xff]   ;;  %v278_v6 = vld [vmem:[#allocation5 + $0x10] sm:$0xff]   ;;  %v279_v7 = vld [vmem:[#allocation5 + $0x8] sm:$0xff]   ;;  %p328_p11 = scmp.lt.s32.totalorder %s212_s25, %s212_s25 }
  0x1f   :  { %247 = vmatprep.subr.bf16.mxu0 %v274_v1  ;;  %v280_v8 = vld [vmem:[#allocation5] sm:$0xff]   ;;  %v282_v9 = vld [vmem:[#allocation2 + $0x8] sm:$0xff]   ;;  %v224_v10 = vld [vmem:[%s390_s2] ss:$0 sm:$0xff]  ;;  %s323_s2 = scalar_lea.vmem %s212_s25, 512 }
  0x20   :  { %p324_p10 = scmp.ne.s32.totalorder %s212_s25, %s323_s2  ;;  %p329_p12 = scmp.lt.s32.totalorder %s323_s2, %s323_s2 }
  0x22   :  { %248 = vmatpush3.bf16.msra.mxu0 %v274_v1  ;;  %p330_p13 = por %p329_p12, %p328_p11 }
  0x23   :  { %249 = vmatprep.subr.bf16.mxu0 %v275_v2 }
  0x24   :  { %p331_p0 = pnand %p330_p13, %p324_p10 }
  0x26   :  { %250 = vmatpush3.bf16.msra.mxu0 %v275_v2 }
  0x27   :  { %251 = vmatprep.subr.bf16.mxu0 %v276_v3 }
  0x2a   :  { %252 = vmatpush3.bf16.msra.mxu0 %v276_v3 }
  0x2b   :  { %253 = vmatprep.subr.bf16.mxu0 %v277_v5 }
  0x2e   :  { %254 = vmatpush3.bf16.msra.mxu0 %v277_v5 }
  0x2f   :  { %255 = vmatprep.subr.bf16.mxu0 %v278_v6 }
  0x32   :  { %256 = vmatpush3.bf16.msra.mxu0 %v278_v6 }
  0x33   :  { %257 = vmatprep.subr.bf16.mxu0 %v279_v7 }
  0x36   :  { %258 = vmatpush3.bf16.msra.mxu0 %v279_v7 }
  0x37   :  { %259 = vmatprep.subr.bf16.mxu0 %v280_v8 }
  0x3a   :  { %260 = vmatpush3.bf16.msra.mxu0 %v280_v8 }
  0x3d   :  { %262 = vmatmul.mubr.bf16.vlgmr.msra.gmra.mxu0 %v282_v9 }
  0xfd   :  { %v263_v11 = vpop.f32.mrf.mxu0 }
  0xfe   :  { %v188_v12 = vadd.f32 %v263_v11, %v224_v10 }
  0xff   :  { %v179_v13 = vpop.f32.mrf.mxu0 }
 0x100   :  { %v196_v14 = vand.u32 2147483647, %v188_v12  ;;  %v180_v15 = vadd.f32 %v224_v10, %v179_v13 }
 0x101   :  { %v264_v16 = vpop.f32.mrf.mxu0 }
 0x102   :  { %v194_v17 = vand.u32 2147483647, %v180_v15  ;;  %v191_v18 = vadd.f32 %v264_v16, %v224_v10  ;;  %204 = vst [vmem:[#allocation7 + $0x10] sm:$0xff] %v196_v14 }
 0x103   :  { %v182_v19 = vpop.f32.mrf.mxu0 }
 0x104   :  { %v197_v20 = vand.u32 2147483647, %v191_v18  ;;  %v183_v21 = vadd.f32 %v224_v10, %v182_v19  ;;  %202 = vst [vmem:[#allocation7] sm:$0xff] %v194_v17 }
 0x106   :  { %v195_v22 = vand.u32 2147483647, %v183_v21  ;;  %205 = vst [vmem:[#allocation7 + $0x18] sm:$0xff] %v197_v20 }
 0x108   :  { %203 = vst [vmem:[#allocation7 + $0x8] sm:$0xff] %v195_v22 }
 0x109   :  { %334 = shalt.err (!%p331_p0)
}
 0x10a   :  { %s354_s26 = smov 128   ;;  %s355_s27 = smov 8  }
 0x10b   :  { %217 = dma.vmem_to_hbm [thread:$0]  %s212_s25, 512, %s391_s3, [#allocation4], %s354_s26, %s354_s26, %s355_s27  }
 0x10c   :  { %347 = dma.done.wait [#allocation4], 512  }
 0x10d   :  { %348 = vsyncadd [#allocation4], 4294966784 }
 0x10e   :  { %221 = vsyncpa [#allocation3], 1 }
 0x10f   :  { %222 = vsyncpa [#allocation6], 1 }
 0x110   :  { %223 = vsyncpa [#allocation4], 1 }

</bundles_post_ra>
